<compile_context>
chip_gen: v7x
topology: tpu7x:2x2x1
jax: 0.10.0
libtpu: 0.0.40
codegen_flags: <defaults>
</compile_context>

<pallas_src>
import functools
import math

import jax
import jax.numpy as jnp
from jax.experimental import pallas as pl
from jax.experimental.pallas import tpu as pltpu


def _reglu_fused_kernel(h, x_ref, o_ref):
    # Single contiguous (TM, 2H) input block; static in-kernel slices pick
    # the halves.  jnp.maximum with weak-typed 0.0 preserves the input dtype.
    a = x_ref[:, :h]
    b = x_ref[:, h:]
    o_ref[...] = jnp.maximum(a, 0.0) * b


def _reglu_split_kernel(a_ref, b_ref, o_ref):
    # VMEM-forced H-tiling path: the two halves arrive as separate blocks.
    o_ref[...] = jnp.maximum(a_ref[...], 0.0) * b_ref[...]


def _round_up(x, m):
    return ((x + m - 1) // m) * m


def _vmem_caps():
    """(tile_budget, tm_cap, vmem_limit_cap) sized for this chip generation."""
    try:
        cap = int(pltpu.get_tpu_info().vmem_capacity_bytes)
    except Exception:  # pragma: no cover - be conservative if query fails
        cap = 64 * 1024 * 1024
    if cap <= 64 * 1024 * 1024:
        # v7x: 64 MiB VMEM per TC -> leave headroom for Mosaic scratch.
        return 40 << 20, 512, 48 << 20
    # v5e / v6e: 128 MiB physical VMEM -> bigger tiles are free roofline.
    return 96 << 20, 1024, 110 << 20


def _pick_tiles(rows, h, itemsize):
    """Pick (tm, th, rows_padded, vmem_limit_cap)."""
    # Sublane granularity: sub-32-bit dtypes pack along sublanes
    # (f32 -> 8 rows, bf16 -> 16, int8/fp8 -> 32).
    sub = 8 * max(1, 4 // itemsize)
    budget, tm_cap, vmem_limit_cap = _vmem_caps()

    # Per-row double-buffered bytes for the full-H path:
    # (2H input + H output) * 2 buffers.
    bytes_per_row = 6 * h * itemsize
    max_tm = budget // bytes_per_row

    if max_tm >= sub:
        # Preferred path: never tile H.  Keep DMAs maximally contiguous and
        # the output slab lane-dense; shrink TM instead.
        th = h
        tm = min(tm_cap, (max_tm // sub) * sub)
    elif h % 128 == 0:
        # VMEM-forced H tiling (very large H, lane-aligned).
        tm = sub
        th = (min(h, max(128, budget // (6 * sub * itemsize))) // 128) * 128
        while th > 128 and h % th != 0:
            th -= 128
    else:
        # TODO(synk): extreme unaligned H; keep full H and rely on the scoped
        # VMEM override (will fail only for pathological shapes).
        th, tm = h, sub

    # Never exceed the (padded) row count.
    rows_pad = _round_up(rows, sub)
    tm = max(sub, min(tm, rows_pad))

    # Guarantee >=2 grid blocks when rows allow, so v7x's second TensorCore
    # has work (two TCs issuing DMAs is what saturates its HBM).
    n_h_blocks = max(1, h // th)
    if (pl.cdiv(rows_pad, tm) * n_h_blocks) < 2 and rows_pad >= 2 * sub:
        tm = _round_up(pl.cdiv(rows_pad, 2), sub)

    rows_pad = _round_up(rows, tm)
    return tm, th, rows_pad, vmem_limit_cap


def reglu(x):
    """ReGLU: a, b = split(x, 2, axis=-1); return relu(a) * b."""
    *lead, two_h = x.shape
    assert two_h % 2 == 0, "last dim must be even"
    h = two_h // 2
    rows = math.prod(lead) if lead else 1
    itemsize = int(jnp.dtype(x.dtype).itemsize)

    tm, th, rows_pad, vmem_limit_cap = _pick_tiles(rows, h, itemsize)

    x2d = x.reshape(rows, two_h)
    if rows_pad != rows:
        # Zero-pad rows up to a multiple of TM (relu(0)*0 == 0; sliced off
        # below).  Unambiguously safe vs. a ragged last block.
        x2d = jnp.pad(x2d, ((0, rows_pad - rows), (0, 0)))

    grid = (rows_pad // tm, h // th)
    n_h_blocks = h // th

    if th == h:
        # Fast path: one contiguous (TM, 2H) block per step, halves sliced
        # in-kernel.  Works for aligned and unaligned H alike.
        kernel = functools.partial(_reglu_fused_kernel, h)
        operands = (x2d,)
        in_specs = [pl.BlockSpec((tm, two_h), lambda i, j: (i, 0))]
    else:
        # VMEM-forced H tiling: pass the slab twice; column-offset index maps
        # pick the left/right halves (no extra copy of x).
        kernel = _reglu_split_kernel
        operands = (x2d, x2d)
        in_specs = [
            pl.BlockSpec((tm, th), lambda i, j: (i, j)),
            pl.BlockSpec((tm, th), lambda i, j: (i, j + n_h_blocks)),
        ]

    out_spec = pl.BlockSpec((tm, th), lambda i, j: (i, j))

    # Double-buffered (2H in + H out) tiles + headroom, capped per generation.
    tile_bytes = 6 * tm * th * itemsize
    vmem_limit = int(min(vmem_limit_cap,
                         max(32 * 1024 * 1024, tile_bytes + tile_bytes // 4)))

    out = pl.pallas_call(
        kernel,
        out_shape=jax.ShapeDtypeStruct((rows_pad, h), x.dtype),
        grid_spec=pltpu.PrefetchScalarGridSpec(
            num_scalar_prefetch=0,
            grid=grid,
            in_specs=in_specs,
            out_specs=out_spec,
        ),
        compiler_params=pltpu.CompilerParams(
            # Pure elementwise: every grid point is independent -> both axes
            # parallel (dual-TC sharding on v7x).
            dimension_semantics=("parallel", "parallel"),
            vmem_limit_bytes=vmem_limit,
        ),
        cost_estimate=pl.CostEstimate(
            flops=2 * rows * h,                      # max + mul per element
            transcendentals=0,
            bytes_accessed=3 * rows * h * itemsize,  # read 2H, write H per row
        ),
    )(*operands)

    out = out[:rows]
    return out.reshape(*lead, h) if lead else out.reshape(h)


if __name__ == "__main__":
    key = jax.random.PRNGKey(0)

    # Small shape consistent with the module: (batch=2, seq=8, features=32).
    x = jax.random.normal(key, (2, 8, 32), dtype=jnp.float32)
    y = jax.block_until_ready(reglu(x))
    a, b = jnp.split(x, 2, axis=-1)
    y_ref = jnp.maximum(a, 0.0) * b
    assert y.shape == (2, 8, 16)
    assert jnp.allclose(y, y_ref, atol=1e-6), "mismatch vs reference (small)"

    # Lane-dense full-H fast path (H multiple of 128) in f32.
    x2 = jax.random.normal(jax.random.PRNGKey(1), (4, 128, 512), dtype=jnp.float32)
    y2 = jax.block_until_ready(reglu(x2))
    a2, b2 = jnp.split(x2, 2, axis=-1)
    assert y2.shape == (4, 128, 256)
    assert jnp.allclose(y2, jnp.maximum(a2, 0.0) * b2, atol=1e-6), \
        "mismatch vs reference (tiled f32)"

    # bf16 path with a row count that is not a multiple of the tile (padding)
    # and exercises the dtype-aware sublane granularity.
    x3 = jax.random.normal(jax.random.PRNGKey(2), (3, 7, 256), dtype=jnp.bfloat16)
    y3 = jax.block_until_ready(reglu(x3))
    a3, b3 = jnp.split(x3, 2, axis=-1)
    y3_ref = jnp.maximum(a3, 0.0).astype(jnp.bfloat16) * b3
    assert y3.shape == (3, 7, 128)
    assert jnp.allclose(y3.astype(jnp.float32), y3_ref.astype(jnp.float32),
                        atol=1e-2), "mismatch vs reference (bf16 padded)"

    print("KERNEL_OK")
</pallas_src>

<mosaic_0001>
module attributes {stable_mosaic.version = 11 : i64} {
  func.func @_reglu_fused_kernel(%arg0: i32, %arg1: i32, %arg2: memref<8x32xf32, #tpu.memory_space<vmem>>, %arg3: memref<8x16xf32, #tpu.memory_space<vmem>>) attributes {dimension_semantics = [#tpu.dimension_semantics<parallel>, #tpu.dimension_semantics<parallel>], iteration_bounds = array<i64: 2, 1>, scalar_prefetch = 0 : i64, scratch_operands = 0 : i64, tpu.core_type = #tpu.core_type<tc>, window_params = [{transform_indices = @transform_0, window_bounds = array<i64: 8, 32>}, {transform_indices = @transform_1, window_bounds = array<i64: 8, 16>}]} {
    %c0 = arith.constant 0 : index
    %c0_0 = arith.constant 0 : index
    %0 = vector.load %arg2[%c0, %c0_0] : memref<8x32xf32, #tpu.memory_space<vmem>>, vector<8x16xf32>
    %c0_1 = arith.constant 0 : index
    %c16 = arith.constant 16 : index
    %1 = vector.load %arg2[%c0_1, %c16] : memref<8x32xf32, #tpu.memory_space<vmem>>, vector<8x16xf32>
    %cst = arith.constant 0.000000e+00 : f32
    %2 = vector.broadcast %cst : f32 to vector<8x16xf32>
    %3 = arith.maximumf %0, %2 : vector<8x16xf32>
    %4 = arith.mulf %3, %1 : vector<8x16xf32>
    %c0_2 = arith.constant 0 : index
    %c0_3 = arith.constant 0 : index
    %5 = vector.load %arg3[%c0_2, %c0_3] : memref<8x16xf32, #tpu.memory_space<vmem>>, vector<8x16xf32>
    tpu.vector_store %arg3[%c0_2, %c0_3], %4 {strides = array<i32>} : memref<8x16xf32, #tpu.memory_space<vmem>>, vector<8x16xf32>,
    return
  }
  func.func @transform_0(%arg0: i32, %arg1: i32) -> (i32, i32) {
    %c0_i32 = arith.constant 0 : i32
    %c0_i32_0 = arith.constant 0 : i32
    return %arg0, %c0_i32 : i32, i32
  }
  func.func @transform_1(%arg0: i32, %arg1: i32) -> (i32, i32) {
    %c0_i32 = arith.constant 0 : i32
    return %arg0, %arg1 : i32, i32
  }
}

</mosaic_0001>

<bundles_post_ra>
// kernel: tpu_custom_call.1
= control target key start
LH: loop header
LB: loop body
LE: loop exit
PB: predicated region body
PF: predicated region fallthrough
CT: control target
= control target key end

     0   :  { %6 = vsyncpa [#allocation3], 0  ;;  %s624_s0 = inlined_call_operand.hbm [shape: f32[16,32], index: 0, kind: input, shape index: {}]   ;;  %s625_s1 = inlined_call_operand.hbm [shape: f32[16,16], index: 1, kind: output, shape index: {}]  }
   0x1   :  { %8 = vsyncpa [#allocation3 + $0x1], 0 }
   0x2   :  { %9 = vsyncpa [#allocation4], 0 }
   0x3   :  { %11 = vsyncpa [#allocation4 + $0x1], 0  ;;  %s452_s6 = smov 0   ;;  %s454_s7 = smov 0  }
   0x4   :  { %s456_s8 = smov 0   ;;  %s458_s9 = smov 0  }
   0x5   :  { %s460_s10 = smov 0   ;;  %s462_s11 = smov 0  }
   0x6 LB: > { %s249_s12 = sadd.s32 4294967295, %s437_s11   ;;  %s250_s13 = sadd.s32 4294967294, %s437_s11   ;;  %s437_s11 = sphi %s462_s11, %s17_s11   ;;  %s433_s10 = sphi %s460_s10, %s641_s10   ;;  %s429_s9 = sphi %s458_s9, %s640_s9   ;;  %s425_s8 = sphi %s456_s8, %s639_s8   ;;  %s421_s7 = sphi %s454_s7, %s638_s7   ;;  %s417_s6 = sphi %s452_s6, %s637_s6  }
   0x7   : > { %s29_s14 = sadd.s32 1, %s433_s10  ;;  %s36_s15 = sadd.s32 1, %s425_s8 }
   0x8   : > { %p31_p0 = scmp.ge.s32.totalorder %s29_s14, 2  ;;  %p43_p1 = scmp.ne.s32.totalorder %s425_s8, %s421_s7 }
   0x9   : > { %p44_p2 = scmp.eq.s32.totalorder %s437_s11, 0  ;;  %p49_p3 = scmp.ne.s32.totalorder %s421_s7, %s417_s6 }
   0xa   : > { %s643_s14 = smov (%p31_p0, %s29_s14), 0  ;;  %p50_p5 = scmp.eq.s32.totalorder %s249_s12, 0 }
   0xb   : > { %p493_p4 = por %p44_p2, %p43_p1  ;;  %s33_s17 = ssub.s32 %s433_s10, %s643_s14 }
   0xc   : > { %p75_p6 = scmp.eq.s32.totalorder %s249_s12, 1  ;;  %p34_p7 = scmp.eq.s32.totalorder %s33_s17, 0 }
   0xd   : > { %p499_p8 = por %p50_p5, %p49_p3  ;;  %p81_p10 = scmp.eq.s32.totalorder %s250_s13, 1 }
   0xe   : > { %p503_p9 = por %p75_p6, %p43_p1  ;;  %p274_p13 = scmp.lt.s32.totalorder %s437_s11, 2 }
   0xf   : > { %s508_s20 = scalar_select %p34_p7, %s425_s8, %s36_s15  }
  0x10   : > { %s629_s19 = scalar_select %p503_p9, 1, 0 }
  0x11   : > { %p510_p11 = por %p81_p10, %p49_p3  ;;  %s101_s22 = sand.u32 1, %s425_s8  }
  0x12   : > { %s253_s23 = sshll.u32 %s101_s22, 3  ;;  %s254_s24 = sshll.u32 %s433_s10, 7 }
  0x13   : > { %s630_s21 = scalar_select %p510_p11, 1, 0 }
  0x14   : > { %s521_s27 = scalar_lea.hbm %s624_s0, %s254_s24  ;;  %s105_s28 = scalar_lea.vmem [#allocation2], %s253_s23 }
  0x15   : > { %s112_s29 = sshll.u32 %s105_s28, 4  ;;  %p527_p0 = pnand %p274_p13, %p493_p4  ;;  %s523_s29 = int_to_ptr.vmem [resolvable:$true] %s112_s29 }
  0x16   : > { %s102_s2 = scalar_lea.sflag [#allocation3], %s101_s22  ;;  %s325_s3 = scalar_lea.hbm %s521_s27, 128 }
  0x17   : > { %p326_p3 = scmp.ne.s32.totalorder %s521_s27, %s325_s3  ;;  %p327_p5 = pneg %p527_p0 }
  0x18   : > { %s330_s12 = scalar_lea.hbm %s624_s0, 256  ;;  %p331_p4 = scmp.lt.u32.totalorder %s521_s27, %s624_s0 }
  0x19   : > { %p328_p6 = pnand %p327_p5, %p326_p3  ;;  %p332_p10 = scmp.lt.u32.totalorder %s330_s12, %s325_s3 }
  0x1a   : > { %p334_p12 = scmp.lt.u32.totalorder %s325_s3, %s521_s27 }
  0x1b   : > { %p329_p7 = pneg %p328_p6  ;;  %p333_p13 = por %p332_p10, %p331_p4 }
  0x1d   : > { %p335_p1 = por %p334_p12, %p333_p13 }
  0x1f   : > { %p336_p2 = pnand %p335_p1, %p329_p7 }
  0x21   : > { %339 = shalt.err (!%p336_p2)
}
  0x22   : > { %s340_s16 = scalar_lea.vmem %s523_s29, 128  ;;  %s439_s17 = smov [#allocation2]  }
  0x23   : > { %p341_p3 = scmp.ne.s32.totalorder %s523_s29, %s340_s16  ;;  %s345_s22 = sshll.u32 %s439_s17, 4  ;;  %s346_s22 = int_to_ptr.vmem [resolvable:$false] %s345_s22 }
  0x24   : > { %s347_s23 = scalar_lea.vmem %s346_s22, 256  ;;  %p348_p9 = scmp.lt.s32.totalorder %s523_s29, %s346_s22 }
  0x25   : > { %p343_p6 = pnand %p341_p3, %p327_p5  ;;  %p349_p4 = scmp.lt.s32.totalorder %s347_s23, %s340_s16 }
  0x27   : > { %p344_p11 = pneg %p343_p6  ;;  %p350_p10 = por %p349_p4, %p348_p9 }
  0x29   : > { %p351_p12 = pnand %p350_p10, %p344_p11 }
  0x2b   : > { %354 = shalt.err (!%p351_p12)
}
  0x2c   : > { %269 = dma.hbm_to_vmem [thread:$0]  (!%p527_p0), %s521_s27, 128, %s523_s29, %s102_s2  }
  0x2d   : > { %p632_p1 = scmp.lt.s32.totalorder %s437_s11, 3  ;;  %p633_p2 = scmp.ge.s32.totalorder %s437_s11, 1 }
  0x2f   : > { %p118_p5 = pnand %p633_p2, %p632_p1 }
  0x30   : > { %s563_s24 = sand.u32 (!%p118_p5), 1, %s421_s7  }
  0x31   : > { %121 = sbr.rel (%p118_p5) target bundleno = 189 (0xbd), region = 24  ;;  %s256_s25 = sshll.u32 (!%p118_p5), %s563_s24, 3 }
  0x32   : > { %s124_s26 = scalar_lea.sflag (!%p118_p5), [#allocation3], %s563_s24  ;;  %s127_s28 = scalar_lea.vmem (!%p118_p5), [#allocation2], %s256_s25 }
  0x38   : > { %408 = dma.done.wait (%p499_p8), %s124_s26, 128  }
  0x39   : > { %410 = vsyncadd (%p499_p8), %s124_s26, 4294967168  ;;  %v146_v0 = vld [vmem:[%s127_s28] sm:$0xff]  ;;  %s440_s27 = smov 112   ;;  %s259_s29 = sshll.u32 %s429_s9, 7  ;;  %vm153_vm0 = vcmask 130048  }
  0x3a   : > { %149 = vrot.lane.b32.xlu0 %v146_v0, %s440_s27  ;;  %v147_v1 = vmax.f32 %v146_v0, 0.0  ;;  %s145_s30 = scalar_lea.vmem [#allocation5], %s256_s25  ;;  %s575_s5 = scalar_lea.hbm %s625_s1, %s259_s29 }
  0x3b   : > { %s170_s2 = sshll.u32 %s145_s30, 4  ;;  %s156_s18 = scalar_lea.sflag [#allocation4], %s563_s24  ;;  %s577_s2 = int_to_ptr.vmem [resolvable:$true] %s170_s2 }
  0x3c   : > { %s355_s12 = scalar_lea.vmem %s577_s2, 128  ;;  %p634_p9 = scmp.ne.s32.totalorder %s629_s19, 0 }
  0x3d   : > { %p356_p8 = scmp.ne.s32.totalorder %s577_s2, %s355_s12  ;;  %s441_s9 = smov [#allocation5]  }
  0x3e   : > { %s359_s13 = sshll.u32 %s441_s9, 4  ;;  %s360_s13 = int_to_ptr.vmem [resolvable:$false] %s359_s13 }
  0x3f   : > { %p357_p11 = pnand %p356_p8, %p634_p9  ;;  %s361_s15 = scalar_lea.vmem %s360_s13, 256 }
  0x40   : > { %p362_p7 = scmp.lt.s32.totalorder %s577_s2, %s360_s13  ;;  %p363_p13 = scmp.lt.s32.totalorder %s361_s15, %s355_s12 }
  0x41   : > { %p358_p0 = pneg %p357_p11 }
  0x42   : > { %p364_p3 = por %p363_p13, %p362_p7 }
  0x44   : > { %p365_p6 = pnand %p364_p3, %p358_p0 }
  0xac   : > { %v150_v2 = vpop.permute.xlu0 %149 }
  0xad   : > { %v152_v3 = vmul.f32 %v150_v2, %v147_v1 }
  0xaf   : > { %154 = vst.msk [vmem:[%s145_s30] sm:$0xff] %vm153_vm0, %v152_v3 }
  0xb0   : > { %368 = shalt.err (!%p365_p6)
}
  0xb1   : > { %s369_s16 = scalar_lea.hbm %s575_s5, 128  ;;  %s373_s23 = scalar_lea.hbm %s625_s1, 256 }
  0xb2   : > { %p370_p4 = scmp.ne.s32.totalorder %s575_s5, %s369_s16  ;;  %p374_p1 = scmp.lt.u32.totalorder %s575_s5, %s625_s1 }
  0xb3   : > { %p375_p2 = scmp.lt.u32.totalorder %s373_s23, %s369_s16  ;;  %p377_p8 = scmp.lt.u32.totalorder %s369_s16, %s575_s5 }
  0xb4   : > { %p371_p10 = pnand %p370_p4, %p634_p9 }
  0xb5   : > { %p376_p5 = por %p375_p2, %p374_p1 }
  0xb6   : > { %p372_p12 = pneg %p371_p10 }
  0xb7   : > { %p378_p11 = por %p377_p8, %p376_p5 }
  0xb9   : > { %p379_p0 = pnand %p378_p11, %p372_p12 }
  0xbb   : > { %382 = shalt.err (!%p379_p0)
}
  0xbc   : > { %264 = dma.vmem_to_hbm [thread:$0]  (%p634_p9), %s577_s2, 128, %s575_s5, %s156_s18  }
  0xbd PF: > { %s182_s26 = sand.u32 1, %s417_s6   ;;  %p635_p7 = scmp.ne.s32.totalorder %s630_s21, 0 }
  0xbe   : > { %p636_p13 = scmp.ge.s32.totalorder %s437_s11, 2  ;;  %s183_s28 = scalar_lea.sflag [#allocation4], %s182_s26 }
  0xc0   : > { %p271_p3 = pnand %p636_p13, %p635_p7 }
  0xc2   : > { %412 = dma.done.wait (!%p271_p3), %s183_s28, 128  }
  0xc3   : > { %414 = vsyncadd (!%p271_p3), %s183_s28, 4294967168  ;;  %s17_s11 = sadd.s32 1, %s437_s11   ;;  %s637_s6 = smov %s421_s7 }
  0xc4   : > { %p14_p6 = scmp.ge.s32.totalorder %s17_s11, 4   ;;  %s638_s7 = smov %s425_s8 }
  0xc5   : > { %s639_s8 = smov %s508_s20  ;;  %s640_s9 = smov %s433_s10 }
  0xc6   : > { %s641_s10 = smov %s643_s14  ;;  %16 = sbr.rel (!%p14_p6) target bundleno = 6 (0x6), region = 69 }
  0xcd   :  { %188 = vsyncpa [#allocation3], 1 }
  0xce   :  { %190 = vsyncpa [#allocation3 + $0x1], 1 }
  0xcf   :  { %191 = vsyncpa [#allocation4], 1 }
  0xd0   :  { %193 = vsyncpa [#allocation4 + $0x1], 1 }

</bundles_post_ra>
